<compile_context>
chip_gen: v5e
topology: v5e:2x2
jax: 0.10.0
libtpu: 0.0.40
codegen_flags: <defaults>
</compile_context>

<pallas_src>
import functools

import jax
import jax.numpy as jnp
from jax.experimental import pallas as pl
from jax.experimental.pallas import tpu as pltpu


_MIN_LANE_N = 128  # below this, dispatch to the row-LN (D-on-lanes) path


def _cdiv(a, b):
    return (a + b - 1) // b


def _vmem_capacity_bytes():
    try:
        return int(pltpu.get_tpu_info().vmem_capacity_bytes)
    except Exception:
        return 64 << 20  # conservative (v7x-sized) fallback


def _has_bf16_vpu():
    # v6e / v7x have a bf16 VPU; v5e and older do not.
    try:
        kind = jax.devices()[0].device_kind.lower()
    except Exception:
        return False
    return ("v6" in kind) or ("v7" in kind)


def _budget_params(itemsize):
    cap = _vmem_capacity_bytes()
    big_vmem = cap >= (100 << 20)          # v5e/v6e: 128 MiB physical
    if big_vmem:
        target_bytes = (12 if itemsize >= 4 else 8) << 20
        budget_cap = 96 << 20
    else:                                   # v7x: 64 MiB physical
        target_bytes = (6 if itemsize >= 4 else 4) << 20
        budget_cap = 48 << 20
    return target_bytes, budget_cap


# ---------------------------------------------------------------------------
# Kernel bodies
# ---------------------------------------------------------------------------

def _ln_channels_kernel(x_ref, g_ref, b_ref, o_ref, *, eps, inv_d, bf16_apply):
    """LayerNorm over axis 1 of a (TILE_R, D, TILE_N) block; g/b are (1, D, 1)."""
    x = x_ref[...].astype(jnp.float32)
    # Single-pass statistics: one traversal accumulates sum and sum-of-squares.
    s1 = jnp.sum(x, axis=1, keepdims=True)                  # (TILE_R, 1, TILE_N)
    s2 = jnp.sum(x * x, axis=1, keepdims=True)
    mean = s1 * inv_d
    # var = E[x^2] - mean^2 ; clamp guards against catastrophic cancellation.
    var = jnp.maximum(s2 * inv_d - mean * mean, 0.0)
    inv = jax.lax.rsqrt(var + eps)
    if bf16_apply:
        # v6e/v7x bf16 VALU: do the per-element normalize+affine in bf16
        # (stats stayed fp32 above).
        o_ref[...] = ((x_ref[...] - mean.astype(jnp.bfloat16))
                      * inv.astype(jnp.bfloat16)
                      * g_ref[...].astype(jnp.bfloat16)
                      + b_ref[...].astype(jnp.bfloat16)).astype(o_ref.dtype)
    else:
        o_ref[...] = ((x - mean) * inv * g_ref[...].astype(jnp.float32)
                      + b_ref[...].astype(jnp.float32)).astype(o_ref.dtype)


def _ln_rows_kernel(x_ref, g_ref, b_ref, o_ref, *, eps, inv_d, bf16_apply):
    """LayerNorm over the last axis of a (TILE_ROWS, D) block; g/b are (1, D)."""
    x = x_ref[...].astype(jnp.float32)
    s1 = jnp.sum(x, axis=-1, keepdims=True)                  # (TILE_ROWS, 1)
    s2 = jnp.sum(x * x, axis=-1, keepdims=True)
    mean = s1 * inv_d
    var = jnp.maximum(s2 * inv_d - mean * mean, 0.0)
    inv = jax.lax.rsqrt(var + eps)
    if bf16_apply:
        o_ref[...] = ((x_ref[...] - mean.astype(jnp.bfloat16))
                      * inv.astype(jnp.bfloat16)
                      * g_ref[...].astype(jnp.bfloat16)
                      + b_ref[...].astype(jnp.bfloat16)).astype(o_ref.dtype)
    else:
        o_ref[...] = ((x - mean) * inv * g_ref[...].astype(jnp.float32)
                      + b_ref[...].astype(jnp.float32)).astype(o_ref.dtype)


# ---------------------------------------------------------------------------
# Tile sizing (generation- and dtype-aware)
# ---------------------------------------------------------------------------

def _choose_tiles_channels(R, D, N, itemsize):
    target_bytes, budget_cap = _budget_params(itemsize)
    headroom = 4 << 20
    # Per-element VMEM cost: double-buffered in + out tiles (4*itemsize) plus
    # the fp32 upcast temporaries inside the body (~2 * 4 bytes).
    per_elem = 4 * itemsize + 8
    max_tile_elems = max((budget_cap - headroom) // per_elem, 128)
    target_elems = min(target_bytes // itemsize, max_tile_elems)

    # Lane axis: full N when modest; otherwise a balanced split rounded up to a
    # multiple of 128 so stores stay unmasked and the last block isn't nearly
    # empty.
    max_tile_n = 4096
    if N <= max_tile_n:
        tile_n = N
    else:
        n_splits = _cdiv(N, max_tile_n)
        tile_n = min(max_tile_n, 128 * _cdiv(_cdiv(N, n_splits), 128))
    # Shrink tile_n (multiples of 128) if even a single row-slab blows the budget.
    if D * tile_n > target_elems and tile_n > 128:
        tile_n = max(128, ((target_elems // max(D, 1)) // 128) * 128)

    tile_r = max(1, min(R, target_elems // max(D * tile_n, 1)))
    # v7x has 2 TensorCores: never let the grid collapse to a single block.
    if _cdiv(R, tile_r) * _cdiv(N, tile_n) < 2 and R >= 2:
        tile_r = _cdiv(R, 2)

    tile_elems = tile_r * D * tile_n
    budget = 4 * tile_elems * itemsize + 2 * tile_elems * 4 + headroom
    budget = int(min(max(budget, 32 << 20), budget_cap))
    return int(tile_r), int(tile_n), budget


def _choose_tile_rows(rows, D, itemsize):
    target_bytes, budget_cap = _budget_params(itemsize)
    headroom = 4 << 20
    per_elem = 4 * itemsize + 8
    max_tile_elems = max((budget_cap - headroom) // per_elem, 8 * D)
    target_elems = min(target_bytes // itemsize, max_tile_elems)

    tile_rows = max(8, ((target_elems // max(D, 1)) // 8) * 8)
    if tile_rows >= rows:
        tile_rows = rows
    # Keep both v7x TensorCores busy: at least 2 grid blocks when possible.
    if _cdiv(rows, tile_rows) < 2 and rows > 8:
        tile_rows = max(8, 8 * _cdiv(_cdiv(rows, 2), 8))

    tile_elems = tile_rows * D
    budget = 4 * tile_elems * itemsize + 2 * tile_elems * 4 + headroom
    budget = int(min(max(budget, 32 << 20), budget_cap))
    return int(tile_rows), budget


# ---------------------------------------------------------------------------
# pallas_call wrappers
# ---------------------------------------------------------------------------

def layernorm_channels(x3, gamma, beta, *, eps=1e-5):
    """LayerNorm over axis 1 (channels) of a (R, D, N) array, N lane-dense."""
    R, D, N = x3.shape
    itemsize = jnp.dtype(x3.dtype).itemsize
    tile_r, tile_n, vmem_budget = _choose_tiles_channels(R, D, N, itemsize)
    grid = (_cdiv(R, tile_r), _cdiv(N, tile_n))
    bf16_apply = (x3.dtype == jnp.bfloat16) and _has_bf16_vpu()
    kernel = functools.partial(_ln_channels_kernel, eps=float(eps),
                               inv_d=1.0 / D, bf16_apply=bf16_apply)

    g3 = gamma.reshape(1, D, 1)
    b3 = beta.reshape(1, D, 1)
    cost = pl.CostEstimate(flops=7 * R * D * N,
                           transcendentals=R * N,
                           bytes_accessed=2 * R * D * N * itemsize)

    return pl.pallas_call(
        kernel,
        out_shape=jax.ShapeDtypeStruct((R, D, N), x3.dtype),
        grid_spec=pltpu.PrefetchScalarGridSpec(
            num_scalar_prefetch=0,
            grid=grid,
            in_specs=[
                pl.BlockSpec((tile_r, D, tile_n), lambda r, n: (r, 0, n)),
                pl.BlockSpec((1, D, 1), lambda r, n: (0, 0, 0)),
                pl.BlockSpec((1, D, 1), lambda r, n: (0, 0, 0)),
            ],
            out_specs=pl.BlockSpec((tile_r, D, tile_n), lambda r, n: (r, 0, n)),
        ),
        compiler_params=pltpu.CompilerParams(
            dimension_semantics=("parallel", "parallel"),
            vmem_limit_bytes=vmem_budget,
        ),
        cost_estimate=cost,
    )(x3, g3, b3)


def layernorm_rows(x2, gamma, beta, *, eps=1e-5):
    """Classic row LayerNorm over the last axis of a (rows, D) array."""
    rows, D = x2.shape
    itemsize = jnp.dtype(x2.dtype).itemsize
    tile_rows, vmem_budget = _choose_tile_rows(rows, D, itemsize)
    grid = (_cdiv(rows, tile_rows),)
    bf16_apply = (x2.dtype == jnp.bfloat16) and _has_bf16_vpu()
    kernel = functools.partial(_ln_rows_kernel, eps=float(eps),
                               inv_d=1.0 / D, bf16_apply=bf16_apply)

    g2 = gamma.reshape(1, D)
    b2 = beta.reshape(1, D)
    cost = pl.CostEstimate(flops=7 * rows * D,
                           transcendentals=rows,
                           bytes_accessed=2 * rows * D * itemsize)

    return pl.pallas_call(
        kernel,
        out_shape=jax.ShapeDtypeStruct((rows, D), x2.dtype),
        grid_spec=pltpu.PrefetchScalarGridSpec(
            num_scalar_prefetch=0,
            grid=grid,
            in_specs=[
                pl.BlockSpec((tile_rows, D), lambda r: (r, 0)),
                pl.BlockSpec((1, D), lambda r: (0, 0)),
                pl.BlockSpec((1, D), lambda r: (0, 0)),
            ],
            out_specs=pl.BlockSpec((tile_rows, D), lambda r: (r, 0)),
        ),
        compiler_params=pltpu.CompilerParams(
            dimension_semantics=("parallel",),
            vmem_limit_bytes=vmem_budget,
        ),
        cost_estimate=cost,
    )(x2, g2, b2)


def modern_tcn_layernorm(x, gamma, beta, *, eps=1e-5):
    """Forward of ModernTCN LayerNorm: (B, M, D, N) -> (B, M, D, N).

    Semantically identical to permute -> reshape -> nn.LayerNorm(D) -> reshape
    -> permute.  For N >= 128 the permutes are folded into the kernel's
    reduction axis (no HBM transposes); for small N we use the classic
    D-on-lanes row-LN formulation (the tiny XLA transpose is cheap there).
    """
    B, M, D, N = x.shape
    if N >= _MIN_LANE_N:
        x3 = x.reshape(B * M, D, N)          # free reshape (merges leading dims)
        y3 = layernorm_channels(x3, gamma, beta, eps=eps)
        return y3.reshape(B, M, D, N)
    # Small-N regime: lane-dense on D instead of wasting ~(1 - N/128) of each vreg.
    xt = jnp.transpose(x, (0, 1, 3, 2)).reshape(B * M * N, D)
    yt = layernorm_rows(xt, gamma, beta, eps=eps)
    return jnp.transpose(yt.reshape(B, M, N, D), (0, 1, 3, 2))


def _reference(x, gamma, beta, *, eps):
    """Plain-JAX reference with the same semantics as the PyTorch module."""
    xt = jnp.transpose(x, (0, 1, 3, 2))                   # (B, M, N, D)
    mean = jnp.mean(xt, axis=-1, keepdims=True)
    var = jnp.mean((xt - mean) ** 2, axis=-1, keepdims=True)
    y = (xt - mean) / jnp.sqrt(var + eps) * gamma + beta
    return jnp.transpose(y, (0, 1, 3, 2))                 # (B, M, D, N)


if __name__ == "__main__":
    key = jax.random.PRNGKey(0)
    kx, kg, kb, kx2 = jax.random.split(key, 4)

    # --- small-N shape: exercises the row-LN (D-on-lanes) dispatch ---
    B, M, D, N = 2, 4, 32, 16
    x = jax.random.normal(kx, (B, M, D, N), dtype=jnp.float32)
    gamma = 1.0 + 0.1 * jax.random.normal(kg, (D,), dtype=jnp.float32)
    beta = 0.1 * jax.random.normal(kb, (D,), dtype=jnp.float32)

    out = jax.block_until_ready(modern_tcn_layernorm(x, gamma, beta))
    ref = _reference(x, gamma, beta, eps=1e-5)
    assert out.shape == (B, M, D, N)
    assert jnp.max(jnp.abs(out - ref)) < 1e-4

    # --- larger-N shape: exercises the lane-dense channel-reduce kernel ---
    B2, M2, D2, N2 = 2, 2, 16, 256
    x2 = jax.random.normal(kx2, (B2, M2, D2, N2), dtype=jnp.float32)
    gamma2 = 1.0 + 0.1 * jax.random.normal(kg, (D2,), dtype=jnp.float32)
    beta2 = 0.1 * jax.random.normal(kb, (D2,), dtype=jnp.float32)

    out2 = jax.block_until_ready(modern_tcn_layernorm(x2, gamma2, beta2))
    ref2 = _reference(x2, gamma2, beta2, eps=1e-5)
    assert out2.shape == (B2, M2, D2, N2)
    assert jnp.max(jnp.abs(out2 - ref2)) < 1e-4

    print("KERNEL_OK")
</pallas_src>

<mosaic_0001>
module attributes {stable_mosaic.version = 11 : i64} {
  func.func @_ln_rows_kernel(%arg0: i32, %arg1: memref<64x32xf32, #tpu.memory_space<vmem>>, %arg2: memref<1x32xf32, #tpu.memory_space<vmem>>, %arg3: memref<1x32xf32, #tpu.memory_space<vmem>>, %arg4: memref<64x32xf32, #tpu.memory_space<vmem>>) attributes {dimension_semantics = [#tpu.dimension_semantics<parallel>], iteration_bounds = array<i64: 2>, scalar_prefetch = 0 : i64, scratch_operands = 0 : i64, tpu.core_type = #tpu.core_type<tc>, window_params = [{transform_indices = @transform_0, window_bounds = array<i64: 64, 32>}, {pipeline_mode = #tpu.pipeline_mode<synchronous>, transform_indices = @transform_1, window_bounds = array<i64: 1, 32>}, {pipeline_mode = #tpu.pipeline_mode<synchronous>, transform_indices = @transform_2, window_bounds = array<i64: 1, 32>}, {transform_indices = @transform_3, window_bounds = array<i64: 64, 32>}]} {
    %c0 = arith.constant 0 : index
    %c0_0 = arith.constant 0 : index
    %0 = vector.load %arg1[%c0, %c0_0] : memref<64x32xf32, #tpu.memory_space<vmem>>, vector<64x32xf32>
    %cst = arith.constant dense<0.000000e+00> : vector<64xf32>
    %1 = vector.multi_reduction <add>, %0, %cst [1] : vector<64x32xf32> to vector<64xf32>
    %2 = vector.shape_cast %1 : vector<64xf32> to vector<64x1xf32>
    %3 = arith.mulf %0, %0 : vector<64x32xf32>
    %cst_1 = arith.constant dense<0.000000e+00> : vector<64xf32>
    %4 = vector.multi_reduction <add>, %3, %cst_1 [1] : vector<64x32xf32> to vector<64xf32>
    %5 = vector.shape_cast %4 : vector<64xf32> to vector<64x1xf32>
    %cst_2 = arith.constant 3.125000e-02 : f32
    %6 = vector.broadcast %cst_2 : f32 to vector<64x1xf32>
    %7 = arith.mulf %2, %6 : vector<64x1xf32>
    %cst_3 = arith.constant 3.125000e-02 : f32
    %8 = vector.broadcast %cst_3 : f32 to vector<64x1xf32>
    %9 = arith.mulf %5, %8 : vector<64x1xf32>
    %10 = arith.mulf %7, %7 : vector<64x1xf32>
    %11 = arith.subf %9, %10 : vector<64x1xf32>
    %cst_4 = arith.constant 0.000000e+00 : f32
    %12 = vector.broadcast %cst_4 : f32 to vector<64x1xf32>
    %13 = arith.maximumf %11, %12 : vector<64x1xf32>
    %cst_5 = arith.constant 9.99999974E-6 : f32
    %14 = vector.broadcast %cst_5 : f32 to vector<64x1xf32>
    %15 = arith.addf %13, %14 : vector<64x1xf32>
    %16 = math.rsqrt %15 : vector<64x1xf32>
    %17 = vector.broadcast %7 : vector<64x1xf32> to vector<64x32xf32>
    %18 = arith.subf %0, %17 : vector<64x32xf32>
    %19 = vector.broadcast %16 : vector<64x1xf32> to vector<64x32xf32>
    %20 = arith.mulf %18, %19 : vector<64x32xf32>
    %c0_6 = arith.constant 0 : index
    %c0_7 = arith.constant 0 : index
    %21 = vector.load %arg2[%c0_6, %c0_7] : memref<1x32xf32, #tpu.memory_space<vmem>>, vector<1x32xf32>
    %22 = vector.broadcast %21 : vector<1x32xf32> to vector<64x32xf32>
    %23 = arith.mulf %20, %22 : vector<64x32xf32>
    %c0_8 = arith.constant 0 : index
    %c0_9 = arith.constant 0 : index
    %24 = vector.load %arg3[%c0_8, %c0_9] : memref<1x32xf32, #tpu.memory_space<vmem>>, vector<1x32xf32>
    %25 = vector.broadcast %24 : vector<1x32xf32> to vector<64x32xf32>
    %26 = arith.addf %23, %25 : vector<64x32xf32>
    %c0_10 = arith.constant 0 : index
    %c0_11 = arith.constant 0 : index
    %27 = vector.load %arg4[%c0_10, %c0_11] : memref<64x32xf32, #tpu.memory_space<vmem>>, vector<64x32xf32>
    tpu.vector_store %arg4[%c0_10, %c0_11], %26 {strides = array<i32>} : memref<64x32xf32, #tpu.memory_space<vmem>>, vector<64x32xf32>,
    return
  }
  func.func @transform_0(%arg0: i32) -> (i32, i32) {
    %c0_i32 = arith.constant 0 : i32
    %c0_i32_0 = arith.constant 0 : i32
    return %arg0, %c0_i32 : i32, i32
  }
  func.func @transform_1(%arg0: i32) -> (i32, i32) {
    %c0_i32 = arith.constant 0 : i32
    %c0_i32_0 = arith.constant 0 : i32
    %c0_i32_1 = arith.constant 0 : i32
    return %c0_i32, %c0_i32_0 : i32, i32
  }
  func.func @transform_2(%arg0: i32) -> (i32, i32) {
    %c0_i32 = arith.constant 0 : i32
    %c0_i32_0 = arith.constant 0 : i32
    %c0_i32_1 = arith.constant 0 : i32
    return %c0_i32, %c0_i32_0 : i32, i32
  }
  func.func @transform_3(%arg0: i32) -> (i32, i32) {
    %c0_i32 = arith.constant 0 : i32
    %c0_i32_0 = arith.constant 0 : i32
    return %arg0, %c0_i32 : i32, i32
  }
}

</mosaic_0001>

<bundles_post_ra>
// kernel: tpu_custom_call.1
= control target key start
LH: loop header
LB: loop body
LE: loop exit
PB: predicated region body
PF: predicated region fallthrough
CT: control target
= control target key end

     0   :  { %s536_s12 = smov 0   ;;  %s765_s0 = inlined_call_operand.vmem [shape: f32[128,32], index: 0, kind: input, shape index: {}]   ;;  %s766_s1 = inlined_call_operand.vmem [shape: f32[1,32], index: 1, kind: input, shape index: {}]   ;;  %s767_s2 = inlined_call_operand.vmem [shape: f32[1,32], index: 2, kind: input, shape index: {}]   ;;  %s768_s3 = inlined_call_operand.vmem [shape: f32[128,32], index: 3, kind: output, shape index: {}]  }
   0x1 LB: > { %s471_s13 = sadd.s32 4294967295, %s514_s12   ;;  %p475_p0 = scmp.ge.s32.totalorder %s514_s12, 1  ;;  %s514_s12 = sphi %s536_s12, %s13_s12  }
   0x2   : > { %p138_p1 = scmp.lt.s32.totalorder %s514_s12, 3 }
   0x4   : > { %p139_p2 = pnand %p475_p0, %p138_p1 }
   0x5   : > { %s476_s14 = sshll.u32 (!%p139_p2), %s471_s13, 3 }
   0x6   : > { %142 = sbr.rel (%p139_p2) target bundleno = 207 (0xcf), region = 32  ;;  %p163_p3 = scmp.lt.s32.totalorder (!%p139_p2), %s476_s14, 15 }
   0xb   : > { %s770_s14 = smov (!%p163_p3, %s476_s14), 15  ;;  %vm182_vm0 = vcmask 261120  }
   0xc   : > { %s477_s15 = sshll.u32 %s770_s14, 3 }
   0xd   : > { %s166_s18 = scalar_lea.vmem %s765_s0, %s477_s15  ;;  %s694_s25 = scalar_lea.vmem %s768_s3, %s477_s15 }
   0xe   : > { %v552_v0 = vld [vmem:[%s166_s18 + $0x20] sm:$0xff]  ;;  %v554_v1 = vld [vmem:[%s166_s18 + $0x10] sm:$0xff]  ;;  %v564_v6 = vld [vmem:[%s166_s18 + $0x28] sm:$0xff] }
   0xf   : > { %v556_v2 = vld [vmem:[%s166_s18] sm:$0xff]  ;;  %v195_v3 = vsel %vm182_vm0, %v552_v0, 0.0  ;;  %v189_v4 = vsel %vm182_vm0, %v554_v1, 0.0  ;;  %v566_v7 = vld [vmem:[%s166_s18 + $0x18] sm:$0xff]  ;;  %v568_v8 = vld [vmem:[%s166_s18 + $0x8] sm:$0xff]  ;;  %v198_v9 = vsel %vm182_vm0, %v564_v6, 0.0  ;;  %v209_v18 = vmul.f32 %v554_v1, %v554_v1 }
  0x10   : > { %v183_v5 = vsel %vm182_vm0, %v556_v2, 0.0  ;;  %196 = vadd.xlane.f32.xlu2 %v195_v3  ;;  %190 = vadd.xlane.f32.xlu1 %v189_v4  ;;  %v192_v10 = vsel %vm182_vm0, %v566_v7, 0.0  ;;  %v186_v11 = vsel %vm182_vm0, %v568_v8, 0.0  ;;  %v207_v12 = vmul.f32 %v556_v2, %v556_v2  ;;  %v578_v13 = vld [vmem:[%s166_s18 + $0x38] sm:$0xff]  ;;  %v580_v14 = vld [vmem:[%s166_s18 + $0x30] sm:$0xff] }
  0x11   : > { %184 = vadd.xlane.f32.xlu0 %v183_v5  ;;  %v204_v15 = vsel %vm182_vm0, %v578_v13, 0.0  ;;  %v201_v17 = vsel %vm182_vm0, %v580_v14, 0.0  ;;  %v210_v19 = vmul.f32 %v566_v7, %v566_v7  ;;  %v208_v20 = vmul.f32 %v568_v8, %v568_v8 }
  0x12   : > { %v215_v16 = vsel %vm182_vm0, %v207_v12, 0.0  ;;  %v221_v21 = vsel %vm182_vm0, %v209_v18, 0.0  ;;  %v212_v24 = vmul.f32 %v564_v6, %v564_v6  ;;  %v213_v25 = vmul.f32 %v580_v14, %v580_v14 }
  0x13   : > { %v224_v22 = vsel %vm182_vm0, %v210_v19, 0.0  ;;  %v218_v23 = vsel %vm182_vm0, %v208_v20, 0.0  ;;  %v211_v26 = vmul.f32 %v552_v0, %v552_v0  ;;  %v214_v30 = vmul.f32 %v578_v13, %v578_v13 }
  0x14   : > { %v230_v27 = vsel %vm182_vm0, %v212_v24, 0.0  ;;  %v233_v28 = vsel %vm182_vm0, %v213_v25, 0.0 }
  0x15   : > { %v227_v29 = vsel %vm182_vm0, %v211_v26, 0.0  ;;  %v236_v31 = vsel %vm182_vm0, %v214_v30, 0.0 }
  0x18   : > { %199 = vadd.xlane.f32.xlu2 %v198_v9  ;;  %193 = vadd.xlane.f32.xlu1 %v192_v10 }
  0x19   : > { %187 = vadd.xlane.f32.xlu0 %v186_v11 }
  0x20   : > { %205 = vadd.xlane.f32.xlu1 %v204_v15  ;;  %216 = vadd.xlane.f32.xlu2 %v215_v16 }
  0x21   : > { %202 = vadd.xlane.f32.xlu0 %v201_v17 }
  0x28   : > { %222 = vadd.xlane.f32.xlu1 %v221_v21  ;;  %225 = vadd.xlane.f32.xlu2 %v224_v22 }
  0x29   : > { %219 = vadd.xlane.f32.xlu0 %v218_v23 }
  0x30   : > { %231 = vadd.xlane.f32.xlu1 %v230_v27  ;;  %234 = vadd.xlane.f32.xlu2 %v233_v28 }
  0x31   : > { %228 = vadd.xlane.f32.xlu0 %v227_v29 }
  0x39   : > { %237 = vadd.xlane.f32.xlu0 %v236_v31 }
  0x83   : > { %v197_v32 = vpop.xlane.xlu2 %196  ;;  %v191_v33 = vpop.xlane.xlu1 %190 }
  0x84   : > { %v185_v34 = vpop.xlane.xlu0 %184  ;;  %v614_v45 = vmul.f32 0.03125, %v191_v33  ;;  %v630_v10 = vmul.f32 0.03125, %v197_v32 }
  0x85   : > { %v608_v38 = vmul.f32 0.03125, %v185_v34 }
  0x86   : > { %v257_v50 = vmul.f32 %v614_v45, %v614_v45  ;;  %v259_v25 = vmul.f32 %v630_v10, %v630_v10 }
  0x87   : > { %v255_v41 = vmul.f32 %v608_v38, %v608_v38 }
  0x8b   : > { %v200_v35 = vpop.xlane.xlu2 %199  ;;  %v194_v36 = vpop.xlane.xlu1 %193 }
  0x8c   : > { %v188_v37 = vpop.xlane.xlu0 %187  ;;  %v616_v46 = vmul.f32 0.03125, %v194_v36  ;;  %v626_v62 = vmul.f32 0.03125, %v200_v35 }
  0x8d   : > { %v618_v48 = vmul.f32 0.03125, %v188_v37 }
  0x8e   : > { %v258_v53 = vmul.f32 %v616_v46, %v616_v46  ;;  %v260_v19 = vmul.f32 %v626_v62, %v626_v62 }
  0x8f   : > { %v256_v57 = vmul.f32 %v618_v48, %v618_v48 }
  0x93   : > { %v610_v39 = vpop.xlane.xlu1 %205  ;;  %v217_v40 = vpop.xlane.xlu2 %216 }
  0x94   : > { %v247_v42 = vmul.f32 0.03125, %v217_v40  ;;  %v203_v43 = vpop.xlane.xlu0 %202 }
  0x95   : > { %v628_v4 = vmul.f32 0.03125, %v203_v43 }
  0x96   : > { %v263_v44 = vsub.f32 %v247_v42, %v255_v41 }
  0x97   : > { %v261_v23 = vmul.f32 %v628_v4, %v628_v4 }
  0x98   : > { %v271_v47 = vmax.f32 %v263_v44, 0.0  ;;  %v367_v44 = vsub.f32 %v556_v2, %v608_v38 }
  0x9a   : > { %v279_v49 = vadd.f32 1e-05, %v271_v47  ;;  %v659_v47 = vmul.f32 0.03125, %v610_v39  ;;  %v370_v39 = vsub.f32 %v566_v7, %v616_v46 }
  0x9b   : > { %v223_v51 = vpop.xlane.xlu1 %222  ;;  %v226_v52 = vpop.xlane.xlu2 %225 }
  0x9c   : > { %492 = vrsqrt.f32 %v279_v49  ;;  %v249_v54 = vmul.f32 0.03125, %v223_v51  ;;  %v250_v55 = vmul.f32 0.03125, %v226_v52  ;;  %v220_v56 = vpop.xlane.xlu0 %219  ;;  %vm293_vm2 = vweird.f32 %v279_v49 }
  0x9d   : > { %v248_v58 = vmul.f32 0.03125, %v220_v56  ;;  %v369_v52 = vsub.f32 %v554_v1, %v614_v45 }
  0x9e   : > { %v265_v59 = vsub.f32 %v249_v54, %v257_v50  ;;  %v266_v60 = vsub.f32 %v250_v55, %v258_v53  ;;  %v678_v54 = vld [vmem:[%s767_s2] ss:$0 sm:$0xff] }
  0x9f   : > { %v264_v61 = vsub.f32 %v248_v58, %v256_v57 }
  0xa0   : > { %v273_v63 = vmax.f32 %v265_v59, 0.0  ;;  %v274_v3 = vmax.f32 %v266_v60, 0.0  ;;  %v262_v59 = vmul.f32 %v659_v47, %v659_v47 }
  0xa1   : > { %v272_v5 = vmax.f32 %v264_v61, 0.0 }
  0xa2   : > { %v493_v9 = vpop.eup %492  ;;  %v632_v11 = vadd.f32 1e-05, %v273_v63  ;;  %v634_v12 = vadd.f32 1e-05, %v274_v3 }
  0xa3   : > { %v288_v15 = vmul.f32 %v493_v9, %v279_v49  ;;  %v636_v16 = vadd.f32 1e-05, %v272_v5  ;;  %v232_v17 = vpop.xlane.xlu1 %231  ;;  %v235_v18 = vpop.xlane.xlu2 %234  ;;  %vm294_vm1 = vweird.f32 %v493_v9  ;;  %v664_v49 = vld [vmem:[%s766_s1] ss:$0 sm:$0xff] }
  0xa4   : > { %494 = vrsqrt.f32 %v632_v11  ;;  %v252_v20 = vmul.f32 0.03125, %v232_v17  ;;  %v229_v21 = vpop.xlane.xlu0 %228  ;;  %v253_v24 = vmul.f32 0.03125, %v235_v18  ;;  %vm295_vm3 = vmor %vm293_vm2, %vm294_vm1  ;;  %vm313_vm4 = vweird.f32 %v632_v11 }
  0xa5   : > { %v289_v22 = vmul.f32 %v493_v9, %v288_v15  ;;  %496 = vrsqrt.f32 %v634_v12  ;;  %v251_v27 = vmul.f32 0.03125, %v229_v21  ;;  %vm323_vm9 = vweird.f32 %v634_v12 }
  0xa6   : > { %498 = vrsqrt.f32 %v636_v16  ;;  %v268_v26 = vsub.f32 %v252_v20, %v260_v19  ;;  %v269_v29 = vsub.f32 %v253_v24, %v261_v23  ;;  %vm303_vm10 = vweird.f32 %v636_v16 }
  0xa7   : > { %v290_v28 = vmul.f32 0.5, %v289_v22  ;;  %v267_v31 = vsub.f32 %v251_v27, %v259_v25 }
  0xa8   : > { %v276_v30 = vmax.f32 %v268_v26, 0.0  ;;  %v277_v33 = vmax.f32 %v269_v29, 0.0  ;;  %v368_v26 = vsub.f32 %v568_v8, %v618_v48 }
  0xa9   : > { %v291_v32 = vsub.f32 1.5, %v290_v28  ;;  %v275_v42 = vmax.f32 %v267_v31, 0.0 }
  0xaa   : > { %v495_v34 = vpop.eup %494  ;;  %v647_v35 = vadd.f32 1e-05, %v276_v30  ;;  %v652_v41 = vadd.f32 1e-05, %v277_v33 }
  0xab   : > { %v649_v36 = vpop.eup %496  ;;  %v292_v37 = vmul.f32 %v493_v9, %v291_v32  ;;  %v308_v40 = vmul.f32 %v495_v34, %v632_v11  ;;  %v683_v57 = vadd.f32 1e-05, %v275_v42  ;;  %vm314_vm5 = vweird.f32 %v495_v34 }
  0xac   : > { %v654_v43 = vpop.eup %498  ;;  %v318_v50 = vmul.f32 %v649_v36, %v634_v12  ;;  %500 = vrsqrt.f32 %v647_v35  ;;  %v238_v51 = vpop.xlane.xlu0 %237  ;;  %vm324_vm6 = vweird.f32 %v649_v36  ;;  %vm315_vm8 = vmor %vm313_vm4, %vm314_vm5  ;;  %vm343_vm14 = vweird.f32 %v647_v35 }
  0xad   : > { %v296_v53 = vsel %vm295_vm3, %v493_v9, %v292_v37  ;;  %v309_v2 = vmul.f32 %v495_v34, %v308_v40  ;;  %v298_v38 = vmul.f32 %v654_v43, %v636_v16  ;;  %502 = vrsqrt.f32 %v652_v41  ;;  %vm325_vm11 = vmor %vm323_vm9, %vm324_vm6 }
  0xae   : > { %v375_v55 = vmul.f32 %v367_v44, %v296_v53  ;;  %v319_v56 = vmul.f32 %v649_v36, %v318_v50  ;;  %v254_v58 = vmul.f32 0.03125, %v238_v51  ;;  %504 = vrsqrt.f32 %v683_v57 }
  0xaf   : > { %v310_v1 = vmul.f32 0.5, %v309_v2  ;;  %v299_v45 = vmul.f32 %v654_v43, %v298_v38  ;;  %vm304_vm7 = vweird.f32 %v654_v43  ;;  %v372_v51 = vsub.f32 %v564_v6, %v626_v62 }
  0xb0   : > { %v387_v7 = vmul.f32 %v664_v49, %v375_v55  ;;  %v320_v46 = vmul.f32 0.5, %v319_v56  ;;  %v270_v9 = vsub.f32 %v254_v58, %v262_v59  ;;  %vm305_vm12 = vmor %vm303_vm10, %vm304_vm7  ;;  %vm353_vm2 = vweird.f32 %v652_v41 }
  0xb1   : > { %v311_v60 = vsub.f32 1.5, %v310_v1  ;;  %v300_v61 = vmul.f32 0.5, %v299_v45  ;;  %v373_v38 = vsub.f32 %v580_v14, %v628_v4  ;;  %vm333_vm5 = vweird.f32 %v683_v57 }
  0xb2   : > { %v501_v63 = vpop.eup %500  ;;  %v399_v3 = vadd.f32 %v678_v54, %v387_v7  ;;  %v321_v5 = vsub.f32 1.5, %v320_v46  ;;  %v278_v21 = vmax.f32 %v270_v9, 0.0  ;;  %v371_v14 = vsub.f32 %v552_v0, %v630_v10 }
  0xb3   : > { %v312_v15 = vmul.f32 %v495_v34, %v311_v60  ;;  %v301_v17 = vsub.f32 1.5, %v300_v61  ;;  %v338_v18 = vmul.f32 %v501_v63, %v647_v35  ;;  %v503_v19 = vpop.eup %502  ;;  %vm344_vm13 = vweird.f32 %v501_v63 }
  0xb4   : > { %407 = vst.msk [vmem:[%s694_s25] sm:$0xff] %vm182_vm0, %v399_v3  ;;  %v322_v20 = vmul.f32 %v649_v36, %v321_v5  ;;  %v348_v25 = vmul.f32 %v503_v19, %v652_v41  ;;  %v715_v12 = vadd.f32 1e-05, %v278_v21  ;;  %v505_v16 = vpop.eup %504  ;;  %vm354_vm15 = vweird.f32 %v503_v19  ;;  %vm345_vm1 = vmor %vm343_vm14, %vm344_vm13 }
  0xb5   : > { %v316_v22 = vsel %vm315_vm8, %v495_v34, %v312_v15  ;;  %v302_v23 = vmul.f32 %v654_v43, %v301_v17  ;;  %v339_v24 = vmul.f32 %v501_v63, %v338_v18  ;;  %v328_v8 = vmul.f32 %v505_v16, %v683_v57  ;;  %vm355_vm3 = vmor %vm353_vm2, %vm354_vm15 }
  0xb6   : > { %v377_v27 = vmul.f32 %v369_v52, %v316_v22  ;;  %v326_v11 = vsel %vm325_vm11, %v649_v36, %v322_v20  ;;  %v349_v31 = vmul.f32 %v503_v19, %v348_v25  ;;  %506 = vrsqrt.f32 %v715_v12 }
  0xb7   : > { %v378_v28 = vmul.f32 %v370_v39, %v326_v11  ;;  %v306_v29 = vsel %vm305_vm12, %v654_v43, %v302_v23  ;;  %v340_v30 = vmul.f32 0.5, %v339_v24  ;;  %v329_v42 = vmul.f32 %v505_v16, %v328_v8 }
  0xb8   : > { %v389_v32 = vmul.f32 %v664_v49, %v377_v27  ;;  %v376_v33 = vmul.f32 %v368_v26, %v306_v29  ;;  %v350_v36 = vmul.f32 0.5, %v349_v31  ;;  %vm334_vm4 = vweird.f32 %v505_v16 }
  0xb9   : > { %v390_v48 = vmul.f32 %v664_v49, %v378_v28  ;;  %v341_v34 = vsub.f32 1.5, %v340_v30  ;;  %v330_v53 = vmul.f32 0.5, %v329_v42  ;;  %vm335_vm6 = vmor %vm333_vm5, %vm334_vm4  ;;  %vm363_vm8 = vweird.f32 %v715_v12 }
  0xba   : > { %v401_v37 = vadd.f32 %v678_v54, %v389_v32  ;;  %v388_v40 = vmul.f32 %v664_v49, %v376_v33  ;;  %v351_v50 = vsub.f32 1.5, %v350_v36  ;;  %v374_v3 = vsub.f32 %v578_v13, %v659_v47 }
  0xbb   : > { %v402_v43 = vadd.f32 %v678_v54, %v390_v48  ;;  %v342_v44 = vmul.f32 %v501_v63, %v341_v34  ;;  %v331_v6 = vsub.f32 1.5, %v330_v53 }
  0xbc   : > { %409 = vst.msk [vmem:[%s694_s25 + $0x10] sm:$0xff] %vm182_vm0, %v401_v37  ;;  %v400_v52 = vadd.f32 %v678_v54, %v388_v40  ;;  %v352_v2 = vmul.f32 %v503_v19, %v351_v50  ;;  %v507_v62 = vpop.eup %506 }
  0xbd   : > { %410 = vst.msk [vmem:[%s694_s25 + $0x18] sm:$0xff] %vm182_vm0, %v402_v43  ;;  %v346_v35 = vsel %vm345_vm1, %v501_v63, %v342_v44  ;;  %v332_v45 = vmul.f32 %v505_v16, %v331_v6  ;;  %v358_v41 = vmul.f32 %v507_v62, %v715_v12  ;;  %vm364_vm7 = vweird.f32 %v507_v62 }
  0xbe   : > { %408 = vst.msk [vmem:[%s694_s25 + $0x8] sm:$0xff] %vm182_vm0, %v400_v52  ;;  %v380_v39 = vmul.f32 %v372_v51, %v346_v35  ;;  %v356_v55 = vsel %vm355_vm3, %v503_v19, %v352_v2  ;;  %vm365_vm9 = vmor %vm363_vm8, %vm364_vm7 }
  0xbf   : > { %v381_v1 = vmul.f32 %v373_v38, %v356_v55  ;;  %v336_v59 = vsel %vm335_vm6, %v505_v16, %v332_v45  ;;  %v359_v7 = vmul.f32 %v507_v62, %v358_v41 }
  0xc0   : > { %v392_v56 = vmul.f32 %v664_v49, %v380_v39  ;;  %v379_v46 = vmul.f32 %v371_v14, %v336_v59 }
  0xc1   : > { %v393_v58 = vmul.f32 %v664_v49, %v381_v1  ;;  %v360_v60 = vmul.f32 0.5, %v359_v7 }
  0xc2   : > { %v404_v4 = vadd.f32 %v678_v54, %v392_v56  ;;  %v391_v61 = vmul.f32 %v664_v49, %v379_v46 }
  0xc3   : > { %v405_v57 = vadd.f32 %v678_v54, %v393_v58  ;;  %v361_v0 = vsub.f32 1.5, %v360_v60 }
  0xc4   : > { %412 = vst.msk [vmem:[%s694_s25 + $0x28] sm:$0xff] %vm182_vm0, %v404_v4  ;;  %v403_v10 = vadd.f32 %v678_v54, %v391_v61 }
  0xc5   : > { %413 = vst.msk [vmem:[%s694_s25 + $0x30] sm:$0xff] %vm182_vm0, %v405_v57  ;;  %v362_v63 = vmul.f32 %v507_v62, %v361_v0 }
  0xc6   : > { %411 = vst.msk [vmem:[%s694_s25 + $0x20] sm:$0xff] %vm182_vm0, %v403_v10 }
  0xc7   : > { %v366_v5 = vsel %vm365_vm9, %v507_v62, %v362_v63 }
  0xc8   : > { %v382_v9 = vmul.f32 %v374_v3, %v366_v5 }
  0xca   : > { %v394_v15 = vmul.f32 %v664_v49, %v382_v9 }
  0xcc   : > { %v406_v17 = vadd.f32 %v678_v54, %v394_v15 }
  0xce   : > { %414 = vst.msk [vmem:[%s694_s25 + $0x38] sm:$0xff] %vm182_vm0, %v406_v17 }
  0xcf PF: > { %s13_s12 = sadd.s32 1, %s514_s12  }
  0xd0   : > { %p10_p4 = scmp.ge.s32.totalorder %s13_s12, 4  }
  0xd2   :  { %12 = sbr.rel (!%p10_p4) target bundleno = 1 (0x1), region = 62 }

</bundles_post_ra>
